<compile_context>
chip_gen: v5e
topology: v5e:2x2
jax: 0.10.0
libtpu: 0.0.40
codegen_flags: <defaults>
</compile_context>

<pallas_src>
import functools
import math

import jax
import jax.numpy as jnp
from jax.experimental import pallas as pl
from jax.experimental.pallas import tpu as pltpu


def _round_up(x, m):
    return ((x + m - 1) // m) * m


def _gelu(h, approximate):
    if approximate:
        # tanh GELU -> EUP transcendental slot (overlaps MXU/VALU).
        return jax.nn.gelu(h, approximate=True)
    # Exact erf GELU in f32 (matches torch.nn.GELU default).
    return 0.5 * h * (1.0 + jax.lax.erf(h * (1.0 / math.sqrt(2.0))))


def _embedfc_kernel_fused(x_ref, w1_ref, b1_ref, w2_ref, b2_ref, o_ref,
                          *, approximate_gelu):
    # Whole w2 resident; 1-D grid over batch tiles.
    h = jnp.dot(x_ref[...], w1_ref[...], preferred_element_type=jnp.float32)
    h = h + b1_ref[...].astype(jnp.float32)
    h = _gelu(h, approximate_gelu)
    h = h.astype(w2_ref.dtype)
    y = jnp.dot(h, w2_ref[...], preferred_element_type=jnp.float32)
    y = y + b2_ref[...].astype(jnp.float32)
    o_ref[...] = y.astype(o_ref.dtype)


def _embedfc_kernel_ntiled(x_ref, w1_ref, b1_ref, w2_ref, b2_ref, o_ref, h_ref,
                           *, approximate_gelu):
    # w2 streamed in (emb_p, tile_n) column blocks over grid axis 1; the
    # GELU'd hidden is computed once per batch tile and cached in VMEM.
    @pl.when(pl.program_id(1) == 0)
    def _():
        h = jnp.dot(x_ref[...], w1_ref[...], preferred_element_type=jnp.float32)
        h = h + b1_ref[...].astype(jnp.float32)
        h = _gelu(h, approximate_gelu)
        h_ref[...] = h.astype(h_ref.dtype)

    y = jnp.dot(h_ref[...], w2_ref[...], preferred_element_type=jnp.float32)
    y = y + b2_ref[...].astype(jnp.float32)
    o_ref[...] = y.astype(o_ref.dtype)


def _vmem_capacity_bytes():
    try:
        info = pltpu.get_tpu_info()
        cap = getattr(info, "vmem_capacity_bytes", None)
        if cap:
            return int(cap)
    except Exception:
        pass
    return 64 * 1024 * 1024  # conservative: v7x has 64 MiB per TensorCore


def _maybe_pad2d(a, rows_p, cols_p):
    r, c = a.shape
    if r == rows_p and c == cols_p:
        return a
    return jnp.zeros((rows_p, cols_p), a.dtype).at[:r, :c].set(a)


def embed_fc(x, w1, b1, w2, b2, *, tile_b=None, tile_n=None,
             approximate_gelu=False, compute_dtype=None):
    """Pallas implementation of EmbedFC.forward.

    x:  any shape; flattened to (-1, input_dim) like x.view(-1, input_dim)
    w1: (input_dim, emb_dim)   b1: (emb_dim,)   (W stored (in, out) = torch W.T)
    w2: (emb_dim, emb_dim)     b2: (emb_dim,)
    returns: (N, emb_dim) in x.dtype
    """
    input_dim, emb_dim = w1.shape
    x2 = x.reshape(-1, input_dim)
    n = x2.shape[0]
    out_dtype = x2.dtype

    if compute_dtype is not None:
        # Opt-in low-precision MXU path (documented precision cost: the hidden
        # activation is also quantized to compute_dtype before the 2nd dot).
        x2 = x2.astype(compute_dtype)
        w1 = w1.astype(compute_dtype)
        w2 = w2.astype(compute_dtype)

    x_item = jnp.dtype(x2.dtype).itemsize
    w_item = jnp.dtype(w2.dtype).itemsize
    o_item = jnp.dtype(out_dtype).itemsize

    # ---- Lane-dense feature padding only when misaligned (exact: GELU(0)=0
    #      and zero K-rows / N-cols contribute nothing).  Batch is NOT padded;
    #      the last partial tile is handled by masked stores in-kernel. -------
    in_p = _round_up(input_dim, 128)
    emb_p = _round_up(emb_dim, 128)

    xp = _maybe_pad2d(x2, n, in_p)
    w1p = _maybe_pad2d(w1, in_p, emb_p)
    w2p = _maybe_pad2d(w2, emb_p, emb_p)
    b1p = _maybe_pad2d(b1.reshape(1, -1), 1, emb_p)
    b2p = _maybe_pad2d(b2.reshape(1, -1), 1, emb_p)

    vmem_cap = _vmem_capacity_bytes()

    # ---- Output-column tile of the 2nd matmul: keep w2 whole unless big. ----
    if tile_n is None:
        w2_col_budget = 8 * 1024 * 1024            # per-buffer w2 block budget
        tile_n = (w2_col_budget // max(1, emb_p * w_item)) // 128 * 128
        tile_n = int(max(128, min(emb_p, tile_n)))
    else:
        tile_n = int(max(128, min(emb_p, _round_up(int(tile_n), 128))))
    grid_n = pl.cdiv(emb_p, tile_n)
    fused = grid_n == 1
    if fused:
        tile_n = emb_p

    # ---- Batch tile: multiple of 8 sublanes; >= 2 grid steps when possible
    #      so the "parallel" axis can shard across v7x's two TensorCores. -----
    tb_cap = 1024 if vmem_cap >= 96 * 1024 * 1024 else 512
    if tile_b is None:
        if n <= tb_cap:
            tile_b = max(8, _round_up(pl.cdiv(n, 2), 8)) if n > 8 else 8
        else:
            tile_b = tb_cap
    tile_b = max(8, _round_up(int(tile_b), 8))

    def _vmem_estimate(tb):
        est = 2 * tb * in_p * x_item                      # x double-buffer
        est += 2 * tb * tile_n * o_item                   # out double-buffer
        est += (in_p * emb_p + emb_p) * w_item            # w1 + b1 (single)
        w2buf = 1 if fused else 2                         # streamed when tiled
        est += w2buf * (emb_p * tile_n + tile_n) * w_item
        if not fused:
            est += tb * emb_p * w_item                    # hidden scratch
        est += 3 * tb * max(emb_p, tile_n) * 4            # f32 temps headroom
        return est

    while tile_b > 64 and _vmem_estimate(tile_b) > int(0.8 * vmem_cap):
        tile_b = max(8, _round_up(tile_b // 2, 8))
    grid_b = pl.cdiv(n, tile_b)

    vmem_limit = int(min(max(_vmem_estimate(tile_b) * 3 // 2, 32 * 1024 * 1024),
                         int(0.9 * vmem_cap)))

    def _call(single_buffer_weights):
        def wspec(shape, index_map, invariant):
            if single_buffer_weights and invariant:
                return pl.BlockSpec(shape, index_map,
                                    pipeline_mode=pl.Buffered(1))
            return pl.BlockSpec(shape, index_map)

        if fused:
            kernel = functools.partial(_embedfc_kernel_fused,
                                       approximate_gelu=approximate_gelu)
            grid = (grid_b,)
            in_specs = [
                pl.BlockSpec((tile_b, in_p), lambda i: (i, 0)),
                wspec((in_p, emb_p), lambda i: (0, 0), True),
                wspec((1, emb_p), lambda i: (0, 0), True),
                wspec((emb_p, emb_p), lambda i: (0, 0), True),
                wspec((1, emb_p), lambda i: (0, 0), True),
            ]
            out_specs = pl.BlockSpec((tile_b, emb_p), lambda i: (i, 0))
            scratch = []
            dims = ("parallel",)
        else:
            kernel = functools.partial(_embedfc_kernel_ntiled,
                                       approximate_gelu=approximate_gelu)
            grid = (grid_b, grid_n)
            in_specs = [
                pl.BlockSpec((tile_b, in_p), lambda i, j: (i, 0)),
                wspec((in_p, emb_p), lambda i, j: (0, 0), True),
                wspec((1, emb_p), lambda i, j: (0, 0), True),
                # w2/b2 vary with j: keep default double-buffering to stream.
                pl.BlockSpec((emb_p, tile_n), lambda i, j: (0, j)),
                pl.BlockSpec((1, tile_n), lambda i, j: (0, j)),
            ]
            out_specs = pl.BlockSpec((tile_b, tile_n), lambda i, j: (i, j))
            scratch = [pltpu.VMEM((tile_b, emb_p), w2p.dtype)]
            dims = ("parallel", "arbitrary")

        return pl.pallas_call(
            kernel,
            out_shape=jax.ShapeDtypeStruct((n, emb_p), out_dtype),
            grid_spec=pltpu.PrefetchScalarGridSpec(
                num_scalar_prefetch=0,
                grid=grid,
                in_specs=in_specs,
                out_specs=out_specs,
                scratch_shapes=scratch,
            ),
            compiler_params=pltpu.CompilerParams(
                dimension_semantics=dims,
                vmem_limit_bytes=vmem_limit,
            ),
        )(xp, w1p, b1p, w2p, b2p)

    try:
        out_p = _call(True)
    except Exception:
        # pl.Buffered(1) not accepted on this jax version: fall back to
        # default double-buffered (grid-invariant) weight operands.
        out_p = _call(False)

    if emb_p != emb_dim:
        out_p = out_p[:, :emb_dim]
    return out_p


def _ref_embed_fc(x, w1, b1, w2, b2):
    input_dim = w1.shape[0]
    x2 = x.reshape(-1, input_dim).astype(jnp.float32)
    h = x2 @ w1.astype(jnp.float32) + b1.astype(jnp.float32)
    h = 0.5 * h * (1.0 + jax.lax.erf(h / jnp.sqrt(2.0)))
    return h @ w2.astype(jnp.float32) + b2.astype(jnp.float32)


if __name__ == "__main__":
    key = jax.random.PRNGKey(0)
    kx, k1, kb1, k2, kb2, k3, kb3 = jax.random.split(key, 7)

    # ---- Case 1: EmbedFC(input_dim=16, emb_dim=32) on x of shape (8,4,4) ----
    input_dim, emb_dim = 16, 32
    x = jax.random.normal(kx, (8, 4, 4), dtype=jnp.float32)

    bound1 = 1.0 / math.sqrt(input_dim)
    w1 = jax.random.uniform(k1, (input_dim, emb_dim), jnp.float32, -bound1, bound1)
    b1 = jax.random.uniform(kb1, (emb_dim,), jnp.float32, -bound1, bound1)
    bound2 = 1.0 / math.sqrt(emb_dim)
    w2 = jax.random.uniform(k2, (emb_dim, emb_dim), jnp.float32, -bound2, bound2)
    b2 = jax.random.uniform(kb2, (emb_dim,), jnp.float32, -bound2, bound2)

    out = jax.block_until_ready(embed_fc(x, w1, b1, w2, b2))
    ref = _ref_embed_fc(x, w1, b1, w2, b2)
    assert out.shape == (8, emb_dim)
    assert jnp.allclose(out, ref, atol=1e-5, rtol=1e-5)

    # ---- Case 2: non-divisible batch (13 rows), multi-step grid ------------
    x_odd = jax.random.normal(kx, (13, input_dim), dtype=jnp.float32)
    out_odd = jax.block_until_ready(embed_fc(x_odd, w1, b1, w2, b2, tile_b=8))
    ref_odd = _ref_embed_fc(x_odd, w1, b1, w2, b2)
    assert out_odd.shape == (13, emb_dim)
    assert jnp.allclose(out_odd, ref_odd, atol=1e-5, rtol=1e-5)

    # ---- Case 3: column-tiled second matmul (w2 streamed, hidden cached) ---
    emb_dim3 = 256
    bound1 = 1.0 / math.sqrt(input_dim)
    w1c = jax.random.uniform(k3, (input_dim, emb_dim3), jnp.float32, -bound1, bound1)
    b1c = jax.random.uniform(kb3, (emb_dim3,), jnp.float32, -bound1, bound1)
    bound3 = 1.0 / math.sqrt(emb_dim3)
    w2c = jax.random.uniform(k2, (emb_dim3, emb_dim3), jnp.float32, -bound3, bound3)
    b2c = jax.random.uniform(kb2, (emb_dim3,), jnp.float32, -bound3, bound3)

    out_nt = jax.block_until_ready(
        embed_fc(x_odd, w1c, b1c, w2c, b2c, tile_n=128))
    ref_nt = _ref_embed_fc(x_odd, w1c, b1c, w2c, b2c)
    assert out_nt.shape == (13, emb_dim3)
    assert jnp.allclose(out_nt, ref_nt, atol=1e-4, rtol=1e-4)

    print("KERNEL_OK")
</pallas_src>

<mosaic_0001>
module attributes {stable_mosaic.version = 11 : i64} {
  func.func @_embedfc_kernel_fused(%arg0: i32, %arg1: memref<8x128xf32, #tpu.memory_space<vmem>>, %arg2: memref<128x128xf32, #tpu.memory_space<vmem>>, %arg3: memref<1x128xf32, #tpu.memory_space<vmem>>, %arg4: memref<128x128xf32, #tpu.memory_space<vmem>>, %arg5: memref<1x128xf32, #tpu.memory_space<vmem>>, %arg6: memref<8x128xf32, #tpu.memory_space<vmem>>) attributes {dimension_semantics = [#tpu.dimension_semantics<parallel>], iteration_bounds = array<i64: 1>, scalar_prefetch = 0 : i64, scratch_operands = 0 : i64, tpu.core_type = #tpu.core_type<tc>, window_params = [{transform_indices = @transform_0, window_bounds = array<i64: 8, 128>}, {pipeline_mode = #tpu.pipeline_mode<synchronous>, transform_indices = @transform_1, window_bounds = array<i64: 128, 128>}, {pipeline_mode = #tpu.pipeline_mode<synchronous>, transform_indices = @transform_2, window_bounds = array<i64: 1, 128>}, {pipeline_mode = #tpu.pipeline_mode<synchronous>, transform_indices = @transform_3, window_bounds = array<i64: 128, 128>}, {pipeline_mode = #tpu.pipeline_mode<synchronous>, transform_indices = @transform_4, window_bounds = array<i64: 1, 128>}, {transform_indices = @transform_5, window_bounds = array<i64: 8, 128>}]} {
    %c0 = arith.constant 0 : index
    %c0_0 = arith.constant 0 : index
    %0 = vector.load %arg1[%c0, %c0_0] : memref<8x128xf32, #tpu.memory_space<vmem>>, vector<8x128xf32>
    %c0_1 = arith.constant 0 : index
    %c0_2 = arith.constant 0 : index
    %1 = vector.load %arg2[%c0_1, %c0_2] : memref<128x128xf32, #tpu.memory_space<vmem>>, vector<128x128xf32>
    %cst = arith.constant dense<0.000000e+00> : vector<8x128xf32>
    %2 = tpu.matmul %0, %1, %cst {dimension_numbers = #tpu.dot_dimension_numbers<[1], [0], [0], [1], [0, 0, 1, 1], [], []>} : vector<8x128xf32>, vector<128x128xf32>, vector<8x128xf32> -> vector<8x128xf32>
    %c0_3 = arith.constant 0 : index
    %c0_4 = arith.constant 0 : index
    %3 = vector.load %arg3[%c0_3, %c0_4] : memref<1x128xf32, #tpu.memory_space<vmem>>, vector<1x128xf32>
    %4 = vector.broadcast %3 : vector<1x128xf32> to vector<8x128xf32>
    %5 = arith.addf %2, %4 : vector<8x128xf32>
    %cst_5 = arith.constant 5.000000e-01 : f32
    %6 = vector.broadcast %cst_5 : f32 to vector<8x128xf32>
    %7 = arith.mulf %6, %5 : vector<8x128xf32>
    %cst_6 = arith.constant 0.707106769 : f32
    %8 = vector.broadcast %cst_6 : f32 to vector<8x128xf32>
    %9 = arith.mulf %5, %8 : vector<8x128xf32>
    %10 = math.erf %9 : vector<8x128xf32>
    %cst_7 = arith.constant 1.000000e+00 : f32
    %11 = vector.broadcast %cst_7 : f32 to vector<8x128xf32>
    %12 = arith.addf %11, %10 : vector<8x128xf32>
    %13 = arith.mulf %7, %12 : vector<8x128xf32>
    %c0_8 = arith.constant 0 : index
    %c0_9 = arith.constant 0 : index
    %14 = vector.load %arg4[%c0_8, %c0_9] : memref<128x128xf32, #tpu.memory_space<vmem>>, vector<128x128xf32>
    %cst_10 = arith.constant dense<0.000000e+00> : vector<8x128xf32>
    %15 = tpu.matmul %13, %14, %cst_10 {dimension_numbers = #tpu.dot_dimension_numbers<[1], [0], [0], [1], [0, 0, 1, 1], [], []>} : vector<8x128xf32>, vector<128x128xf32>, vector<8x128xf32> -> vector<8x128xf32>
    %c0_11 = arith.constant 0 : index
    %c0_12 = arith.constant 0 : index
    %16 = vector.load %arg5[%c0_11, %c0_12] : memref<1x128xf32, #tpu.memory_space<vmem>>, vector<1x128xf32>
    %17 = vector.broadcast %16 : vector<1x128xf32> to vector<8x128xf32>
    %18 = arith.addf %15, %17 : vector<8x128xf32>
    %c0_13 = arith.constant 0 : index
    %c0_14 = arith.constant 0 : index
    %19 = vector.load %arg6[%c0_13, %c0_14] : memref<8x128xf32, #tpu.memory_space<vmem>>, vector<8x128xf32>
    tpu.vector_store %arg6[%c0_13, %c0_14], %18 {strides = array<i32>} : memref<8x128xf32, #tpu.memory_space<vmem>>, vector<8x128xf32>,
    return
  }
  func.func @transform_0(%arg0: i32) -> (i32, i32) {
    %c0_i32 = arith.constant 0 : i32
    %c0_i32_0 = arith.constant 0 : i32
    return %arg0, %c0_i32 : i32, i32
  }
  func.func @transform_1(%arg0: i32) -> (i32, i32) {
    %c0_i32 = arith.constant 0 : i32
    %c0_i32_0 = arith.constant 0 : i32
    %c0_i32_1 = arith.constant 0 : i32
    return %c0_i32, %c0_i32_0 : i32, i32
  }
  func.func @transform_2(%arg0: i32) -> (i32, i32) {
    %c0_i32 = arith.constant 0 : i32
    %c0_i32_0 = arith.constant 0 : i32
    %c0_i32_1 = arith.constant 0 : i32
    return %c0_i32, %c0_i32_0 : i32, i32
  }
  func.func @transform_3(%arg0: i32) -> (i32, i32) {
    %c0_i32 = arith.constant 0 : i32
    %c0_i32_0 = arith.constant 0 : i32
    %c0_i32_1 = arith.constant 0 : i32
    return %c0_i32, %c0_i32_0 : i32, i32
  }
  func.func @transform_4(%arg0: i32) -> (i32, i32) {
    %c0_i32 = arith.constant 0 : i32
    %c0_i32_0 = arith.constant 0 : i32
    %c0_i32_1 = arith.constant 0 : i32
    return %c0_i32, %c0_i32_0 : i32, i32
  }
  func.func @transform_5(%arg0: i32) -> (i32, i32) {
    %c0_i32 = arith.constant 0 : i32
    %c0_i32_0 = arith.constant 0 : i32
    return %arg0, %c0_i32 : i32, i32
  }
}

module attributes {stable_mosaic.version = 11 : i64} {
  func.func @_embedfc_kernel_fused(%arg0: i32, %arg1: memref<8x128xf32, #tpu.memory_space<vmem>>, %arg2: memref<128x128xf32, #tpu.memory_space<vmem>>, %arg3: memref<1x128xf32, #tpu.memory_space<vmem>>, %arg4: memref<128x128xf32, #tpu.memory_space<vmem>>, %arg5: memref<1x128xf32, #tpu.memory_space<vmem>>, %arg6: memref<8x128xf32, #tpu.memory_space<vmem>>) attributes {dimension_semantics = [#tpu.dimension_semantics<parallel>], iteration_bounds = array<i64: 1>, scalar_prefetch = 0 : i64, scratch_operands = 0 : i64, tpu.core_type = #tpu.core_type<tc>, window_params = [{transform_indices = @transform_0, window_bounds = array<i64: 8, 128>}, {pipeline_mode = #tpu.pipeline_mode<synchronous>, transform_indices = @transform_1, window_bounds = array<i64: 128, 128>}, {pipeline_mode = #tpu.pipeline_mode<synchronous>, transform_indices = @transform_2, window_bounds = array<i64: 1, 128>}, {pipeline_mode = #tpu.pipeline_mode<synchronous>, transform_indices = @transform_3, window_bounds = array<i64: 128, 128>}, {pipeline_mode = #tpu.pipeline_mode<synchronous>, transform_indices = @transform_4, window_bounds = array<i64: 1, 128>}, {transform_indices = @transform_5, window_bounds = array<i64: 8, 128>}]} {
    %c0 = arith.constant 0 : index
    %c0_0 = arith.constant 0 : index
    %0 = vector.load %arg1[%c0, %c0_0] : memref<8x128xf32, #tpu.memory_space<vmem>>, vector<8x128xf32>
    %c0_1 = arith.constant 0 : index
    %c0_2 = arith.constant 0 : index
    %1 = vector.load %arg2[%c0_1, %c0_2] : memref<128x128xf32, #tpu.memory_space<vmem>>, vector<128x128xf32>
    %cst = arith.constant dense<0.000000e+00> : vector<8x128xf32>
    %2 = tpu.matmul %0, %1, %cst {dimension_numbers = #tpu.dot_dimension_numbers<[1], [0], [0], [1], [0, 0, 1, 1], [], []>} : vector<8x128xf32>, vector<128x128xf32>, vector<8x128xf32> -> vector<8x128xf32>
    %c0_3 = arith.constant 0 : index
    %c0_4 = arith.constant 0 : index
    %3 = vector.load %arg3[%c0_3, %c0_4] : memref<1x128xf32, #tpu.memory_space<vmem>>, vector<1x128xf32>
    %4 = vector.broadcast %3 : vector<1x128xf32> to vector<8x128xf32>
    %5 = arith.addf %2, %4 : vector<8x128xf32>
    %cst_5 = arith.constant 5.000000e-01 : f32
    %6 = vector.broadcast %cst_5 : f32 to vector<8x128xf32>
    %7 = arith.mulf %6, %5 : vector<8x128xf32>
    %cst_6 = arith.constant 0.707106769 : f32
    %8 = vector.broadcast %cst_6 : f32 to vector<8x128xf32>
    %9 = arith.mulf %5, %8 : vector<8x128xf32>
    %10 = math.erf %9 : vector<8x128xf32>
    %cst_7 = arith.constant 1.000000e+00 : f32
    %11 = vector.broadcast %cst_7 : f32 to vector<8x128xf32>
    %12 = arith.addf %11, %10 : vector<8x128xf32>
    %13 = arith.mulf %7, %12 : vector<8x128xf32>
    %c0_8 = arith.constant 0 : index
    %c0_9 = arith.constant 0 : index
    %14 = vector.load %arg4[%c0_8, %c0_9] : memref<128x128xf32, #tpu.memory_space<vmem>>, vector<128x128xf32>
    %cst_10 = arith.constant dense<0.000000e+00> : vector<8x128xf32>
    %15 = tpu.matmul %13, %14, %cst_10 {dimension_numbers = #tpu.dot_dimension_numbers<[1], [0], [0], [1], [0, 0, 1, 1], [], []>} : vector<8x128xf32>, vector<128x128xf32>, vector<8x128xf32> -> vector<8x128xf32>
    %c0_11 = arith.constant 0 : index
    %c0_12 = arith.constant 0 : index
    %16 = vector.load %arg5[%c0_11, %c0_12] : memref<1x128xf32, #tpu.memory_space<vmem>>, vector<1x128xf32>
    %17 = vector.broadcast %16 : vector<1x128xf32> to vector<8x128xf32>
    %18 = arith.addf %15, %17 : vector<8x128xf32>
    %c0_13 = arith.constant 0 : index
    %c0_14 = arith.constant 0 : index
    %19 = vector.load %arg6[%c0_13, %c0_14] : memref<8x128xf32, #tpu.memory_space<vmem>>, vector<8x128xf32>
    tpu.vector_store %arg6[%c0_13, %c0_14], %18 {strides = array<i32>} : memref<8x128xf32, #tpu.memory_space<vmem>>, vector<8x128xf32>,
    return
  }
  func.func @transform_0(%arg0: i32) -> (i32, i32) {
    %c0_i32 = arith.constant 0 : i32
    %c0_i32_0 = arith.constant 0 : i32
    return %arg0, %c0_i32 : i32, i32
  }
  func.func @transform_1(%arg0: i32) -> (i32, i32) {
    %c0_i32 = arith.constant 0 : i32
    %c0_i32_0 = arith.constant 0 : i32
    %c0_i32_1 = arith.constant 0 : i32
    return %c0_i32, %c0_i32_0 : i32, i32
  }
  func.func @transform_2(%arg0: i32) -> (i32, i32) {
    %c0_i32 = arith.constant 0 : i32
    %c0_i32_0 = arith.constant 0 : i32
    %c0_i32_1 = arith.constant 0 : i32
    return %c0_i32, %c0_i32_0 : i32, i32
  }
  func.func @transform_3(%arg0: i32) -> (i32, i32) {
    %c0_i32 = arith.constant 0 : i32
    %c0_i32_0 = arith.constant 0 : i32
    %c0_i32_1 = arith.constant 0 : i32
    return %c0_i32, %c0_i32_0 : i32, i32
  }
  func.func @transform_4(%arg0: i32) -> (i32, i32) {
    %c0_i32 = arith.constant 0 : i32
    %c0_i32_0 = arith.constant 0 : i32
    %c0_i32_1 = arith.constant 0 : i32
    return %c0_i32, %c0_i32_0 : i32, i32
  }
  func.func @transform_5(%arg0: i32) -> (i32, i32) {
    %c0_i32 = arith.constant 0 : i32
    %c0_i32_0 = arith.constant 0 : i32
    return %arg0, %c0_i32 : i32, i32
  }
}

</mosaic_0001>

<bundles_post_ra>
// kernel: tpu_custom_call.1
= control target key start
LH: loop header
LB: loop body
LE: loop exit
PB: predicated region body
PF: predicated region fallthrough
CT: control target
= control target key end

     0   :  { %10 = vsyncpa [#allocation3], 0  ;;  %s377_s0 = inlined_call_operand.hbm [shape: f32[8,128], index: 0, kind: input, shape index: {}]   ;;  %s378_s1 = inlined_call_operand.hbm [shape: f32[128,128], index: 1, kind: input, shape index: {}]   ;;  %s379_s2 = inlined_call_operand.vmem [shape: f32[1,128], index: 2, kind: input, shape index: {}]   ;;  %s380_s3 = inlined_call_operand.hbm [shape: f32[128,128], index: 3, kind: input, shape index: {}]   ;;  %s381_s4 = inlined_call_operand.vmem [shape: f32[1,128], index: 4, kind: input, shape index: {}]   ;;  %s382_s5 = inlined_call_operand.hbm [shape: f32[8,128], index: 5, kind: output, shape index: {}]  }
   0x1   :  { %11 = vsyncpa [#allocation6], 0  ;;  %s28_s20 = sshll.u32 %s378_s1, 4  ;;  %s29_s20 = int_to_ptr.hbm [resolvable:$true] %s28_s20 }
   0x2   :  { %12 = vsyncpa [#allocation4], 0  ;;  %s323_s21 = smov [#allocation5]   ;;  %s18_s25 = sshll.u32 %s377_s0, 4  ;;  %s19_s25 = int_to_ptr.hbm [resolvable:$true] %s18_s25 }
   0x3   :  { %s30_s22 = sshll.u32 %s323_s21, 4  ;;  %s324_s26 = smov 128   ;;  %s31_s22 = int_to_ptr.vmem [resolvable:$true] %s30_s22 }
   0x4   :  { %s325_s27 = smov 8   ;;  %s326_s28 = smov [#allocation2]  }
   0x5   :  { %36 = dma.hbm_to_vmem [thread:$0]  %s29_s20, 2048, %s31_s22, [#allocation6], %s324_s26, %s324_s26, %s325_s27  }
   0x6   :  { %s20_s29 = sshll.u32 %s326_s28, 4  ;;  %s43_s7 = sshll.u32 %s380_s3, 4  ;;  %s21_s29 = int_to_ptr.vmem [resolvable:$true] %s20_s29  ;;  %s44_s7 = int_to_ptr.hbm [resolvable:$true] %s43_s7 }
   0x7   :  { %23 = dma.hbm_to_vmem [thread:$0]  %s19_s25, 128, %s21_s29, [#allocation3]  }
   0x8   :  { %s327_s1 = smov [#allocation7]  }
   0x9   :  { %s45_s8 = sshll.u32 %s327_s1, 4  ;;  %s46_s8 = int_to_ptr.vmem [resolvable:$true] %s45_s8 }
   0xa   :  { %51 = dma.hbm_to_vmem [thread:$0]  %s44_s7, 2048, %s46_s8, [#allocation6], %s324_s26, %s324_s26, %s325_s27  }
   0xb   :  { %317 = dma.done.wait [#allocation3], 128  }
   0xc   :  { %318 = vsyncadd [#allocation3], 4294967168 }
   0xd   :  { %319 = dma.done.wait [#allocation6], 4096  }
   0xe   :  { %320 = vsyncadd [#allocation6], 4294963200  ;;  %v82_v0 = vld [vmem:[#allocation5 + $0x78] sm:$0xff]  ;;  %v81_v1 = vld [vmem:[#allocation5 + $0x70] sm:$0xff]  ;;  %s328_s10 = smov [#allocation8]   ;;  %s199_s14 = sshll.u32 %s382_s5, 4  ;;  %s200_s14 = int_to_ptr.hbm [resolvable:$true] %s199_s14 }
   0xf   :  { %87 = vmatpush.msra.mxu0 %v82_v0  ;;  %v80_v2 = vld [vmem:[#allocation5 + $0x68] sm:$0xff]  ;;  %v79_v3 = vld [vmem:[#allocation5 + $0x60] sm:$0xff]  ;;  %v78_v4 = vld [vmem:[#allocation5 + $0x58] sm:$0xff]  ;;  %s197_s11 = sshll.u32 %s328_s10, 4  ;;  %s198_s11 = int_to_ptr.vmem [resolvable:$true] %s197_s11 }
  0x10   :  { %v77_v5 = vld [vmem:[#allocation5 + $0x50] sm:$0xff]  ;;  %v76_v6 = vld [vmem:[#allocation5 + $0x48] sm:$0xff]  ;;  %v75_v7 = vld [vmem:[#allocation5 + $0x40] sm:$0xff] }
  0x11   :  { %88 = vmatpush.msra.mxu0 %v81_v1  ;;  %v74_v8 = vld [vmem:[#allocation5 + $0x38] sm:$0xff]  ;;  %v73_v9 = vld [vmem:[#allocation5 + $0x30] sm:$0xff]  ;;  %v72_v10 = vld [vmem:[#allocation5 + $0x28] sm:$0xff] }
  0x12   :  { %v71_v11 = vld [vmem:[#allocation5 + $0x20] sm:$0xff]  ;;  %v70_v12 = vld [vmem:[#allocation5 + $0x18] sm:$0xff]  ;;  %v69_v13 = vld [vmem:[#allocation5 + $0x10] sm:$0xff] }
  0x13   :  { %89 = vmatpush.msra.mxu0 %v80_v2  ;;  %v68_v14 = vld [vmem:[#allocation5 + $0x8] sm:$0xff]  ;;  %v67_v15 = vld [vmem:[#allocation5] sm:$0xff]  ;;  %v66_v16 = vld [vmem:[#allocation2] sm:$0xff] }
  0x14   :  { %v166_v17 = vld [vmem:[#allocation7 + $0x78] sm:$0xff]  ;;  %v165_v18 = vld [vmem:[#allocation7 + $0x70] sm:$0xff]  ;;  %v164_v19 = vld [vmem:[#allocation7 + $0x68] sm:$0xff] }
  0x15   :  { %90 = vmatpush.msra.mxu0 %v79_v3  ;;  %171 = vmatpush.msra.mxu1 %v166_v17  ;;  %v163_v20 = vld [vmem:[#allocation7 + $0x60] sm:$0xff]  ;;  %v217_v21 = vld [vmem:[%s379_s2] ss:$0 sm:$0xff]  ;;  %v161_v23 = vld [vmem:[#allocation7 + $0x50] sm:$0xff] }
  0x16   :  { %v162_v22 = vld [vmem:[#allocation7 + $0x58] sm:$0xff]  ;;  %v160_v25 = vld [vmem:[#allocation7 + $0x48] sm:$0xff]  ;;  %v159_v27 = vld [vmem:[#allocation7 + $0x40] sm:$0xff] }
  0x17   :  { %91 = vmatpush.msra.mxu0 %v78_v4  ;;  %172 = vmatpush.msra.mxu1 %v165_v18  ;;  %v158_v29 = vld [vmem:[#allocation7 + $0x38] sm:$0xff]  ;;  %v157_v31 = vld [vmem:[#allocation7 + $0x30] sm:$0xff]  ;;  %v156_v33 = vld [vmem:[#allocation7 + $0x28] sm:$0xff] }
  0x18   :  { %v155_v36 = vld [vmem:[#allocation7 + $0x20] sm:$0xff]  ;;  %v154_v39 = vld [vmem:[#allocation7 + $0x18] sm:$0xff]  ;;  %v153_v42 = vld [vmem:[#allocation7 + $0x10] sm:$0xff] }
  0x19   :  { %92 = vmatpush.msra.mxu0 %v77_v5  ;;  %173 = vmatpush.msra.mxu1 %v164_v19  ;;  %v152_v45 = vld [vmem:[#allocation7 + $0x8] sm:$0xff]  ;;  %v151_v47 = vld [vmem:[#allocation7] sm:$0xff] }
  0x1b   :  { %93 = vmatpush.msra.mxu0 %v76_v6  ;;  %174 = vmatpush.msra.mxu1 %v163_v20 }
  0x1d   :  { %94 = vmatpush.msra.mxu0 %v75_v7  ;;  %175 = vmatpush.msra.mxu1 %v162_v22 }
  0x1f   :  { %95 = vmatpush.msra.mxu0 %v74_v8  ;;  %176 = vmatpush.msra.mxu1 %v161_v23 }
  0x21   :  { %96 = vmatpush.msra.mxu0 %v73_v9  ;;  %177 = vmatpush.msra.mxu1 %v160_v25 }
  0x23   :  { %97 = vmatpush.msra.mxu0 %v72_v10  ;;  %178 = vmatpush.msra.mxu1 %v159_v27 }
  0x25   :  { %98 = vmatpush.msra.mxu0 %v71_v11  ;;  %179 = vmatpush.msra.mxu1 %v158_v29  ;;  %v218_v11 = vld [vmem:[%s381_s4] ss:$0 sm:$0xff] }
  0x27   :  { %99 = vmatpush.msra.mxu0 %v70_v12  ;;  %180 = vmatpush.msra.mxu1 %v157_v31 }
  0x29   :  { %100 = vmatpush.msra.mxu0 %v69_v13  ;;  %181 = vmatpush.msra.mxu1 %v156_v33 }
  0x2b   :  { %101 = vmatpush.msra.mxu0 %v68_v14  ;;  %182 = vmatpush.msra.mxu1 %v155_v36 }
  0x2d   :  { %102 = vmatpush.msra.mxu0 %v67_v15  ;;  %183 = vmatpush.msra.mxu1 %v154_v39 }
  0x2e   :  { %103 = vmatmul.f32.vlgmr.msra.gmra.mxu0 %v66_v16 }
  0x2f   :  { %184 = vmatpush.msra.mxu1 %v153_v42 }
  0x31   :  { %185 = vmatpush.msra.mxu1 %v152_v45 }
  0x33   :  { %186 = vmatpush.msra.mxu1 %v151_v47 }
  0xab   :  { %v104_v24 = vpop.f32.mrf.mxu0 }
  0xac   :  { %v105_v26 = vadd.f32 %v217_v21, %v104_v24 }
  0xae   :  { %v108_v28 = vmul.f32 0.70710677, %v105_v26  ;;  %v107_v8 = vmul.f32 0.5, %v105_v26 }
  0xb0   :  { %v109_v30 = vmul.f32 %v108_v28, %v108_v28 }
  0xb2   :  { %v110_v32 = vmin.f32 %v109_v30, 16.0 }
  0xb4   :  { %v111_v34 = vmul.f32 2.1237322e-06, %v110_v32  ;;  %v122_v35 = vmul.f32 3.8918573e-05, %v110_v32 }
  0xb6   :  { %v112_v37 = vadd.f32 0.00028619796, %v111_v34  ;;  %v123_v38 = vadd.f32 0.001143296, %v122_v35 }
  0xb8   :  { %v113_v40 = vmul.f32 %v112_v37, %v110_v32  ;;  %v124_v41 = vmul.f32 %v123_v38, %v110_v32 }
  0xba   :  { %v125_v43 = vadd.f32 0.014752088, %v124_v41  ;;  %v114_v44 = vadd.f32 0.0036580483, %v113_v40 }
  0xbc   :  { %v126_v46 = vmul.f32 %v125_v43, %v110_v32  ;;  %v115_v49 = vmul.f32 %v114_v44, %v110_v32 }
  0xbe   :  { %v127_v48 = vadd.f32 0.112945676, %v126_v46  ;;  %v116_v52 = vadd.f32 0.05243302, %v115_v49 }
  0xc0   :  { %v128_v50 = vmul.f32 %v127_v48, %v110_v32  ;;  %v117_v55 = vmul.f32 %v116_v52, %v110_v32 }
  0xc2   :  { %v129_v51 = vadd.f32 0.4994258, %v128_v50  ;;  %v118_v56 = vadd.f32 0.18741608, %v117_v55 }
  0xc4   :  { %v130_v53 = vmul.f32 %v129_v51, %v110_v32  ;;  %v119_v58 = vmul.f32 %v118_v56, %v110_v32 }
  0xc6   :  { %v131_v54 = vadd.f32 1.0, %v130_v53  ;;  %v120_v62 = vadd.f32 1.1283791, %v119_v58 }
  0xc8   :  { %219 = vrcp.f32 %v131_v54  ;;  %v143_v61 = vand.u32 2147483648, %v131_v54  ;;  %v141_v0 = vand.u32 2147483647, %v131_v54  ;;  %vm137_vm1 = vweird.f32 %v131_v54 }
  0xc9   :  { %v121_v3 = vmul.f32 %v120_v62, %v108_v28 }
  0xca   :  { %v144_v2 = vor.u32 1.1754944e-38, %v143_v61  ;;  %vm142_vm3 = vcmp.eq.f32.partialorder %v141_v0, 8.507059e+37 }
  0xce   :  { %v220_v57 = vpop.eup %219 }
  0xcf   :  { %v133_v59 = vmul.f32 %v220_v57, %v131_v54  ;;  %vm138_vm0 = vweird.f32 %v220_v57 }
  0xd0   :  { %vm139_vm2 = vmor %vm137_vm1, %vm138_vm0 }
  0xd1   :  { %v134_v60 = vsub.f32 1.0, %v133_v59 }
  0xd3   :  { %v135_v63 = vmul.f32 %v220_v57, %v134_v60 }
  0xd5   :  { %v136_v1 = vadd.f32 %v220_v57, %v135_v63 }
  0xd7   :  { %v140_v4 = vsel %vm139_vm2, %v220_v57, %v136_v1 }
  0xd8   :  { %v145_v5 = vsel %vm142_vm3, %v144_v2, %v140_v4 }
  0xd9   :  { %v146_v6 = vmul.f32 %v145_v5, %v121_v3 }
  0xdb   :  { %v210_v7 = vclamps-f32 %v146_v6, 1.0 }
  0xdd   :  { %v149_v9 = vadd.f32 1.0, %v210_v7 }
  0xdf   :  { %v150_v10 = vmul.f32 %v149_v9, %v107_v8 }
  0xe1   :  { %187 = vmatmul.f32.vlgmr.msra.gmra.mxu1 %v150_v10 }
 0x15e   :  { %v188_v12 = vpop.f32.mrf.mxu1 }
 0x15f   :  { %v189_v13 = vadd.f32 %v218_v11, %v188_v12 }
 0x161   :  { %191 = vst [vmem:[#allocation8] sm:$0xff] %v189_v13 }
 0x162   :  { %202 = dma.vmem_to_hbm [thread:$0]  %s198_s11, 128, %s200_s14, [#allocation4]  }
 0x163   :  { %321 = dma.done.wait [#allocation4], 128  }
 0x164   :  { %322 = vsyncadd [#allocation4], 4294967168 }
 0x165   :  { %207 = vsyncpa [#allocation3], 1 }
 0x166   :  { %208 = vsyncpa [#allocation6], 1 }
 0x167   :  { %209 = vsyncpa [#allocation4], 1 }

// kernel: tpu_custom_call.1
= control target key start
LH: loop header
LB: loop body
LE: loop exit
PB: predicated region body
PF: predicated region fallthrough
CT: control target
= control target key end

     0   :  { %10 = vsyncpa [#allocation3], 0  ;;  %s377_s0 = inlined_call_operand.hbm [shape: f32[8,128], index: 0, kind: input, shape index: {}]   ;;  %s378_s1 = inlined_call_operand.hbm [shape: f32[128,128], index: 1, kind: input, shape index: {}]   ;;  %s379_s2 = inlined_call_operand.vmem [shape: f32[1,128], index: 2, kind: input, shape index: {}]   ;;  %s380_s3 = inlined_call_operand.hbm [shape: f32[128,128], index: 3, kind: input, shape index: {}]   ;;  %s381_s4 = inlined_call_operand.vmem [shape: f32[1,128], index: 4, kind: input, shape index: {}]   ;;  %s382_s5 = inlined_call_operand.hbm [shape: f32[8,128], index: 5, kind: output, shape index: {}]  }
   0x1   :  { %11 = vsyncpa [#allocation6], 0  ;;  %s28_s20 = sshll.u32 %s378_s1, 4  ;;  %s29_s20 = int_to_ptr.hbm [resolvable:$true] %s28_s20 }
   0x2   :  { %12 = vsyncpa [#allocation4], 0  ;;  %s323_s21 = smov [#allocation5]   ;;  %s18_s25 = sshll.u32 %s377_s0, 4  ;;  %s19_s25 = int_to_ptr.hbm [resolvable:$true] %s18_s25 }
   0x3   :  { %s30_s22 = sshll.u32 %s323_s21, 4  ;;  %s324_s26 = smov 128   ;;  %s31_s22 = int_to_ptr.vmem [resolvable:$true] %s30_s22 }
   0x4   :  { %s325_s27 = smov 8   ;;  %s326_s28 = smov [#allocation2]  }
   0x5   :  { %36 = dma.hbm_to_vmem [thread:$0]  %s29_s20, 2048, %s31_s22, [#allocation6], %s324_s26, %s324_s26, %s325_s27  }
   0x6   :  { %s20_s29 = sshll.u32 %s326_s28, 4  ;;  %s43_s7 = sshll.u32 %s380_s3, 4  ;;  %s21_s29 = int_to_ptr.vmem [resolvable:$true] %s20_s29  ;;  %s44_s7 = int_to_ptr.hbm [resolvable:$true] %s43_s7 }
   0x7   :  { %23 = dma.hbm_to_vmem [thread:$0]  %s19_s25, 128, %s21_s29, [#allocation3]  }
   0x8   :  { %s327_s1 = smov [#allocation7]  }
   0x9   :  { %s45_s8 = sshll.u32 %s327_s1, 4  ;;  %s46_s8 = int_to_ptr.vmem [resolvable:$true] %s45_s8 }
   0xa   :  { %51 = dma.hbm_to_vmem [thread:$0]  %s44_s7, 2048, %s46_s8, [#allocation6], %s324_s26, %s324_s26, %s325_s27  }
   0xb   :  { %317 = dma.done.wait [#allocation3], 128  }
   0xc   :  { %318 = vsyncadd [#allocation3], 4294967168 }
   0xd   :  { %319 = dma.done.wait [#allocation6], 4096  }
   0xe   :  { %320 = vsyncadd [#allocation6], 4294963200  ;;  %v82_v0 = vld [vmem:[#allocation5 + $0x78] sm:$0xff]  ;;  %v81_v1 = vld [vmem:[#allocation5 + $0x70] sm:$0xff]  ;;  %s328_s10 = smov [#allocation8]   ;;  %s199_s14 = sshll.u32 %s382_s5, 4  ;;  %s200_s14 = int_to_ptr.hbm [resolvable:$true] %s199_s14 }
   0xf   :  { %87 = vmatpush.msra.mxu0 %v82_v0  ;;  %v80_v2 = vld [vmem:[#allocation5 + $0x68] sm:$0xff]  ;;  %v79_v3 = vld [vmem:[#allocation5 + $0x60] sm:$0xff]  ;;  %v78_v4 = vld [vmem:[#allocation5 + $0x58] sm:$0xff]  ;;  %s197_s11 = sshll.u32 %s328_s10, 4  ;;  %s198_s11 = int_to_ptr.vmem [resolvable:$true] %s197_s11 }
  0x10   :  { %v77_v5 = vld [vmem:[#allocation5 + $0x50] sm:$0xff]  ;;  %v76_v6 = vld [vmem:[#allocation5 + $0x48] sm:$0xff]  ;;  %v75_v7 = vld [vmem:[#allocation5 + $0x40] sm:$0xff] }
  0x11   :  { %88 = vmatpush.msra.mxu0 %v81_v1  ;;  %v74_v8 = vld [vmem:[#allocation5 + $0x38] sm:$0xff]  ;;  %v73_v9 = vld [vmem:[#allocation5 + $0x30] sm:$0xff]  ;;  %v72_v10 = vld [vmem:[#allocation5 + $0x28] sm:$0xff] }
  0x12   :  { %v71_v11 = vld [vmem:[#allocation5 + $0x20] sm:$0xff]  ;;  %v70_v12 = vld [vmem:[#allocation5 + $0x18] sm:$0xff]  ;;  %v69_v13 = vld [vmem:[#allocation5 + $0x10] sm:$0xff] }
  0x13   :  { %89 = vmatpush.msra.mxu0 %v80_v2  ;;  %v68_v14 = vld [vmem:[#allocation5 + $0x8] sm:$0xff]  ;;  %v67_v15 = vld [vmem:[#allocation5] sm:$0xff]  ;;  %v66_v16 = vld [vmem:[#allocation2] sm:$0xff] }
  0x14   :  { %v166_v17 = vld [vmem:[#allocation7 + $0x78] sm:$0xff]  ;;  %v165_v18 = vld [vmem:[#allocation7 + $0x70] sm:$0xff]  ;;  %v164_v19 = vld [vmem:[#allocation7 + $0x68] sm:$0xff] }
  0x15   :  { %90 = vmatpush.msra.mxu0 %v79_v3  ;;  %171 = vmatpush.msra.mxu1 %v166_v17  ;;  %v163_v20 = vld [vmem:[#allocation7 + $0x60] sm:$0xff]  ;;  %v217_v21 = vld [vmem:[%s379_s2] ss:$0 sm:$0xff]  ;;  %v161_v23 = vld [vmem:[#allocation7 + $0x50] sm:$0xff] }
  0x16   :  { %v162_v22 = vld [vmem:[#allocation7 + $0x58] sm:$0xff]  ;;  %v160_v25 = vld [vmem:[#allocation7 + $0x48] sm:$0xff]  ;;  %v159_v27 = vld [vmem:[#allocation7 + $0x40] sm:$0xff] }
  0x17   :  { %91 = vmatpush.msra.mxu0 %v78_v4  ;;  %172 = vmatpush.msra.mxu1 %v165_v18  ;;  %v158_v29 = vld [vmem:[#allocation7 + $0x38] sm:$0xff]  ;;  %v157_v31 = vld [vmem:[#allocation7 + $0x30] sm:$0xff]  ;;  %v156_v33 = vld [vmem:[#allocation7 + $0x28] sm:$0xff] }
  0x18   :  { %v155_v36 = vld [vmem:[#allocation7 + $0x20] sm:$0xff]  ;;  %v154_v39 = vld [vmem:[#allocation7 + $0x18] sm:$0xff]  ;;  %v153_v42 = vld [vmem:[#allocation7 + $0x10] sm:$0xff] }
  0x19   :  { %92 = vmatpush.msra.mxu0 %v77_v5  ;;  %173 = vmatpush.msra.mxu1 %v164_v19  ;;  %v152_v45 = vld [vmem:[#allocation7 + $0x8] sm:$0xff]  ;;  %v151_v47 = vld [vmem:[#allocation7] sm:$0xff] }
  0x1b   :  { %93 = vmatpush.msra.mxu0 %v76_v6  ;;  %174 = vmatpush.msra.mxu1 %v163_v20 }
  0x1d   :  { %94 = vmatpush.msra.mxu0 %v75_v7  ;;  %175 = vmatpush.msra.mxu1 %v162_v22 }
  0x1f   :  { %95 = vmatpush.msra.mxu0 %v74_v8  ;;  %176 = vmatpush.msra.mxu1 %v161_v23 }
  0x21   :  { %96 = vmatpush.msra.mxu0 %v73_v9  ;;  %177 = vmatpush.msra.mxu1 %v160_v25 }
  0x23   :  { %97 = vmatpush.msra.mxu0 %v72_v10  ;;  %178 = vmatpush.msra.mxu1 %v159_v27 }
  0x25   :  { %98 = vmatpush.msra.mxu0 %v71_v11  ;;  %179 = vmatpush.msra.mxu1 %v158_v29  ;;  %v218_v11 = vld [vmem:[%s381_s4] ss:$0 sm:$0xff] }
  0x27   :  { %99 = vmatpush.msra.mxu0 %v70_v12  ;;  %180 = vmatpush.msra.mxu1 %v157_v31 }
  0x29   :  { %100 = vmatpush.msra.mxu0 %v69_v13  ;;  %181 = vmatpush.msra.mxu1 %v156_v33 }
  0x2b   :  { %101 = vmatpush.msra.mxu0 %v68_v14  ;;  %182 = vmatpush.msra.mxu1 %v155_v36 }
  0x2d   :  { %102 = vmatpush.msra.mxu0 %v67_v15  ;;  %183 = vmatpush.msra.mxu1 %v154_v39 }
  0x2e   :  { %103 = vmatmul.f32.vlgmr.msra.gmra.mxu0 %v66_v16 }
  0x2f   :  { %184 = vmatpush.msra.mxu1 %v153_v42 }
  0x31   :  { %185 = vmatpush.msra.mxu1 %v152_v45 }
  0x33   :  { %186 = vmatpush.msra.mxu1 %v151_v47 }
  0xab   :  { %v104_v24 = vpop.f32.mrf.mxu0 }
  0xac   :  { %v105_v26 = vadd.f32 %v217_v21, %v104_v24 }
  0xae   :  { %v108_v28 = vmul.f32 0.70710677, %v105_v26  ;;  %v107_v8 = vmul.f32 0.5, %v105_v26 }
  0xb0   :  { %v109_v30 = vmul.f32 %v108_v28, %v108_v28 }
  0xb2   :  { %v110_v32 = vmin.f32 %v109_v30, 16.0 }
  0xb4   :  { %v111_v34 = vmul.f32 2.1237322e-06, %v110_v32  ;;  %v122_v35 = vmul.f32 3.8918573e-05, %v110_v32 }
  0xb6   :  { %v112_v37 = vadd.f32 0.00028619796, %v111_v34  ;;  %v123_v38 = vadd.f32 0.001143296, %v122_v35 }
  0xb8   :  { %v113_v40 = vmul.f32 %v112_v37, %v110_v32  ;;  %v124_v41 = vmul.f32 %v123_v38, %v110_v32 }
  0xba   :  { %v125_v43 = vadd.f32 0.014752088, %v124_v41  ;;  %v114_v44 = vadd.f32 0.0036580483, %v113_v40 }
  0xbc   :  { %v126_v46 = vmul.f32 %v125_v43, %v110_v32  ;;  %v115_v49 = vmul.f32 %v114_v44, %v110_v32 }
  0xbe   :  { %v127_v48 = vadd.f32 0.112945676, %v126_v46  ;;  %v116_v52 = vadd.f32 0.05243302, %v115_v49 }
  0xc0   :  { %v128_v50 = vmul.f32 %v127_v48, %v110_v32  ;;  %v117_v55 = vmul.f32 %v116_v52, %v110_v32 }
  0xc2   :  { %v129_v51 = vadd.f32 0.4994258, %v128_v50  ;;  %v118_v56 = vadd.f32 0.18741608, %v117_v55 }
  0xc4   :  { %v130_v53 = vmul.f32 %v129_v51, %v110_v32  ;;  %v119_v58 = vmul.f32 %v118_v56, %v110_v32 }
  0xc6   :  { %v131_v54 = vadd.f32 1.0, %v130_v53  ;;  %v120_v62 = vadd.f32 1.1283791, %v119_v58 }
  0xc8   :  { %219 = vrcp.f32 %v131_v54  ;;  %v143_v61 = vand.u32 2147483648, %v131_v54  ;;  %v141_v0 = vand.u32 2147483647, %v131_v54  ;;  %vm137_vm1 = vweird.f32 %v131_v54 }
  0xc9   :  { %v121_v3 = vmul.f32 %v120_v62, %v108_v28 }
  0xca   :  { %v144_v2 = vor.u32 1.1754944e-38, %v143_v61  ;;  %vm142_vm3 = vcmp.eq.f32.partialorder %v141_v0, 8.507059e+37 }
  0xce   :  { %v220_v57 = vpop.eup %219 }
  0xcf   :  { %v133_v59 = vmul.f32 %v220_v57, %v131_v54  ;;  %vm138_vm0 = vweird.f32 %v220_v57 }
  0xd0   :  { %vm139_vm2 = vmor %vm137_vm1, %vm138_vm0 }
  0xd1   :  { %v134_v60 = vsub.f32 1.0, %v133_v59 }
  0xd3   :  { %v135_v63 = vmul.f32 %v220_v57, %v134_v60 }
  0xd5   :  { %v136_v1 = vadd.f32 %v220_v57, %v135_v63 }
  0xd7   :  { %v140_v4 = vsel %vm139_vm2, %v220_v57, %v136_v1 }
  0xd8   :  { %v145_v5 = vsel %vm142_vm3, %v144_v2, %v140_v4 }
  0xd9   :  { %v146_v6 = vmul.f32 %v145_v5, %v121_v3 }
  0xdb   :  { %v210_v7 = vclamps-f32 %v146_v6, 1.0 }
  0xdd   :  { %v149_v9 = vadd.f32 1.0, %v210_v7 }
  0xdf   :  { %v150_v10 = vmul.f32 %v149_v9, %v107_v8 }
  0xe1   :  { %187 = vmatmul.f32.vlgmr.msra.gmra.mxu1 %v150_v10 }
 0x15e   :  { %v188_v12 = vpop.f32.mrf.mxu1 }
 0x15f   :  { %v189_v13 = vadd.f32 %v218_v11, %v188_v12 }
 0x161   :  { %191 = vst [vmem:[#allocation8] sm:$0xff] %v189_v13 }
 0x162   :  { %202 = dma.vmem_to_hbm [thread:$0]  %s198_s11, 128, %s200_s14, [#allocation4]  }
 0x163   :  { %321 = dma.done.wait [#allocation4], 128  }
 0x164   :  { %322 = vsyncadd [#allocation4], 4294967168 }
 0x165   :  { %207 = vsyncpa [#allocation3], 1 }
 0x166   :  { %208 = vsyncpa [#allocation6], 1 }
 0x167   :  { %209 = vsyncpa [#allocation4], 1 }

</bundles_post_ra>
